<compile_context>
chip_gen: v6e
topology: v6e:2x2x1
jax: 0.10.0
libtpu: 0.0.40
codegen_flags: <defaults>
</compile_context>

<pallas_src>
import jax
import jax.numpy as jnp
from jax.experimental import pallas as pl
from jax.experimental.pallas import tpu as pltpu


def _round_up(x: int, m: int) -> int:
    return ((x + m - 1) // m) * m


# ---------------------------------------------------------------------------
# One-time weight preparation (parameter-load time, NOT in the per-call path).
# ---------------------------------------------------------------------------
def prepare_linfeat_weights(weight, d_model, *, lane_multiple=128,
                            dtype=jnp.bfloat16):
    """weight: (n_out, d_model + n_feats) as stored by nn.Linear (bias-free).

    Returns (w_x, w_f): (d_model, n_out_pad) / (n_feats, n_out_pad) in `dtype`
    (bf16 by default -> bf16-native MXU on v6e/v7x, half the VMEM/HBM traffic),
    with n_out_pad = round_up(n_out, lane_multiple) zero-padded columns so the
    kernel's output stores are lane-dense (unmasked vst).
    """
    n_out, total_in = weight.shape
    assert total_in > d_model, "weight input dim must be d_model + n_feats"
    n_out_pad = _round_up(n_out, lane_multiple)
    w_t = weight.T.astype(dtype)                       # (d_model + n_feats, n_out)
    if n_out_pad != n_out:
        w_t = jnp.pad(w_t, ((0, 0), (0, n_out_pad - n_out)))
    return w_t[:d_model, :], w_t[d_model:, :]


# ---------------------------------------------------------------------------
# Kernel bodies.
# ---------------------------------------------------------------------------
def _linfeat_kernel(x_ref, feats_ref, wx_ref, wf_ref, o_ref):
    """Single-K-step body (all of d_model in one tile): no scratch round-trip."""
    acc = jnp.dot(x_ref[...].astype(wx_ref.dtype), wx_ref[...],
                  preferred_element_type=jnp.float32)
    acc = acc + jnp.dot(feats_ref[...].astype(wf_ref.dtype), wf_ref[...],
                        preferred_element_type=jnp.float32)
    o_ref[...] = acc.astype(o_ref.dtype)


def _linfeat_kernel_ktiled(x_ref, feats_ref, wx_ref, wf_ref, o_ref, acc_ref):
    """K-tiled body: f32 VMEM accumulator; the (small) feats matmul is folded
    into the k==0 init, writeback happens at the last K step."""
    k = pl.program_id(2)

    @pl.when(k == 0)
    def _init():
        acc_ref[...] = jnp.dot(feats_ref[...].astype(wf_ref.dtype), wf_ref[...],
                               preferred_element_type=jnp.float32)

    acc_ref[...] += jnp.dot(x_ref[...].astype(wx_ref.dtype), wx_ref[...],
                            preferred_element_type=jnp.float32)

    @pl.when(k == pl.num_programs(2) - 1)
    def _store():
        o_ref[...] = acc_ref[...].astype(o_ref.dtype)


# ---------------------------------------------------------------------------
# Tile sizing / VMEM budgeting.
# ---------------------------------------------------------------------------
def _vmem_budget_bytes() -> int:
    """Generation-aware VMEM budget (~3/4 of capacity, capped at 100 MiB).
    Falls back to a v7x-safe 48 MiB if the hardware query is unavailable."""
    cap = 64 * 1024 * 1024
    try:
        cap = int(pltpu.get_tpu_info().vmem_capacity_bytes)
    except Exception:
        pass
    return max(16 * 1024 * 1024, min(cap * 3 // 4, 100 * 1024 * 1024))


def _pick_tk(d_model: int, tk_max: int) -> int:
    """K tile: either all of d_model, or a multiple of 128 that divides it
    exactly (a partial K tile would feed garbage into the reduction)."""
    if d_model <= tk_max or d_model % 128 != 0:
        return d_model
    tk = max(128, (tk_max // 128) * 128)
    while tk > 128 and d_model % tk != 0:
        tk -= 128
    return tk if d_model % tk == 0 else d_model


def _pick_tn(n_out_pad: int, tn_max: int) -> int:
    """Output-column tile: a multiple of 128 dividing n_out_pad (lane-dense,
    unmasked stores); full width if the weights were not lane-padded."""
    if n_out_pad % 128 != 0:
        return n_out_pad
    tn = max(128, min((tn_max // 128) * 128, n_out_pad))
    while tn > 128 and n_out_pad % tn != 0:
        tn -= 128
    return tn


# ---------------------------------------------------------------------------
# Plain-XLA path (small-batch fallback; also the numerics reference).
# ---------------------------------------------------------------------------
def _linfeat_dense(x, feats, w_x, w_f, n_out, out_dtype, return_padded):
    acc = jnp.dot(x.astype(w_x.dtype), w_x, preferred_element_type=jnp.float32)
    acc = acc + jnp.dot(feats.astype(w_f.dtype), w_f,
                        preferred_element_type=jnp.float32)
    out = acc.astype(out_dtype)
    return out if return_padded else out[:, :n_out]


# ---------------------------------------------------------------------------
# Pallas call construction.
# ---------------------------------------------------------------------------
def _weight_spec(shape, index_map, single_buffer):
    if single_buffer:
        # Block index is constant over the inner loop -> one buffer suffices;
        # halves the weight VMEM footprint at zero pipelining cost.
        return pl.BlockSpec(shape, index_map, pipeline_mode=pl.Buffered(1))
    return pl.BlockSpec(shape, index_map)


def _pallas_linfeat(x, feats, w_x, w_f, out_dtype, tm, tn, tk,
                    vmem_limit_bytes, single_buffer_weights):
    n, d_model = x.shape
    n_feats = feats.shape[1]
    n_out_pad = w_x.shape[1]
    k_tiles = pl.cdiv(d_model, tk)
    grid = (pl.cdiv(n, tm), pl.cdiv(n_out_pad, tn), k_tiles)

    # wf's block index only changes with the coarse column axis -> always safe
    # to single-buffer.  wx's block index changes every K step when K is
    # tiled, so only single-buffer it when k_tiles == 1 (otherwise its DMA
    # would no longer hide behind compute).
    wx_spec = _weight_spec((tk, tn), lambda i, j, k: (k, j),
                           single_buffer_weights and k_tiles == 1)
    wf_spec = _weight_spec((n_feats, tn), lambda i, j, k: (0, j),
                           single_buffer_weights)

    in_specs = [
        pl.BlockSpec((tm, tk), lambda i, j, k: (i, k)),        # x row/K tiles
        pl.BlockSpec((tm, n_feats), lambda i, j, k: (i, 0)),   # feats row tiles
        wx_spec,
        wf_spec,
    ]
    out_spec = pl.BlockSpec((tm, tn), lambda i, j, k: (i, j))

    if k_tiles == 1:
        kernel = _linfeat_kernel
        scratch = []
    else:
        kernel = _linfeat_kernel_ktiled
        scratch = [pltpu.VMEM((tm, tn), jnp.float32)]

    act_is = jnp.dtype(x.dtype).itemsize
    w_is = jnp.dtype(w_x.dtype).itemsize
    out_is = jnp.dtype(out_dtype).itemsize
    cost = pl.CostEstimate(
        flops=2 * n * (d_model + n_feats) * n_out_pad,
        transcendentals=0,
        bytes_accessed=(x.size * act_is + feats.size * act_is
                        + w_x.size * w_is + w_f.size * w_is
                        + n * n_out_pad * out_is),
    )

    return pl.pallas_call(
        kernel,
        out_shape=jax.ShapeDtypeStruct((n, n_out_pad), out_dtype),
        grid_spec=pltpu.PrefetchScalarGridSpec(
            num_scalar_prefetch=0,
            grid=grid,
            in_specs=in_specs,
            out_specs=out_spec,
            scratch_shapes=scratch,
        ),
        compiler_params=pltpu.CompilerParams(
            # Row / output-column tiles are independent -> megacore-shardable;
            # the K reduction axis is last and marked arbitrary.
            dimension_semantics=("parallel", "parallel", "arbitrary"),
            vmem_limit_bytes=int(vmem_limit_bytes),
        ),
        cost_estimate=cost,
    )(x, feats, w_x, w_f)


# ---------------------------------------------------------------------------
# Public wrapper (hot path).
# ---------------------------------------------------------------------------
def linfeat_concat(x, feats, w_x, w_f, n_out, *, out_dtype=None,
                   tm_max=512, tn_max=512, tk_max=2048,
                   return_padded=False, force_pallas=False,
                   min_pallas_rows=1024):
    """LinFeatConcat.forward: cat([x, feats], dim=1) @ W.T -> (N, n_out).

    If return_padded=True the lane-padded (N, n_out_pad) buffer is returned,
    skipping the extra HBM pass of the trailing [:, :n_out] slice.
    """
    n, d_model = x.shape
    nf_rows, n_feats = feats.shape
    assert nf_rows == n
    assert w_x.shape[0] == d_model and w_f.shape[0] == n_feats
    n_out_pad = w_x.shape[1]
    assert w_f.shape[1] == n_out_pad and n_out <= n_out_pad
    out_dtype = x.dtype if out_dtype is None else jnp.dtype(out_dtype)

    # Tiny batches: pallas_call fixed overhead (+ the slice) dominates and XLA
    # fuses the two small dots fine -> plain jnp fallback.
    if not force_pallas and n < min_pallas_rows:
        return _linfeat_dense(x, feats, w_x, w_f, n_out, out_dtype, return_padded)

    # ---- tile sizing from a generation-aware VMEM budget -------------------
    budget = _vmem_budget_bytes()
    tk = _pick_tk(d_model, tk_max)
    tn = _pick_tn(n_out_pad, tn_max)
    k_tiles = pl.cdiv(d_model, tk)

    act_is = jnp.dtype(x.dtype).itemsize
    w_is = jnp.dtype(w_x.dtype).itemsize
    out_is = jnp.dtype(out_dtype).itemsize
    weight_bytes = (tk * tn * w_is * (1 if k_tiles == 1 else 2)
                    + n_feats * tn * w_is)
    # double-buffered x / feats / out streams + f32 accumulator, per output row
    per_row_bytes = 2 * (tk + n_feats) * act_is + 2 * tn * out_is + tn * 4
    avail = budget - weight_bytes - (2 << 20)          # headroom for internals
    tm_cap = min(int(tm_max), max(16, int(avail) // per_row_bytes))
    tm_cap = max(16, (tm_cap // 16) * 16)              # bf16 packs [16,128]/vreg
    tm = n if n <= tm_cap else tm_cap

    # Try single-buffered resident weights first (review: halves weight VMEM at
    # zero cost); fall back to default double-buffering if this JAX/Mosaic
    # build rejects pipeline_mode=pl.Buffered(1).
    out_padded, last_exc = None, None
    for single_buffer_weights in (True, False):
        try:
            out_padded = _pallas_linfeat(
                x, feats, w_x, w_f, out_dtype, tm, tn, tk,
                vmem_limit_bytes=budget,
                single_buffer_weights=single_buffer_weights)
            break
        except Exception as exc:   # pragma: no cover - compatibility fallback
            last_exc = exc
            out_padded = None
    if out_padded is None:
        raise last_exc

    if return_padded or n_out == n_out_pad:
        return out_padded
    # NOTE: this slice is an extra HBM pass over the output; prefer
    # return_padded=True and let the consumer read only the first n_out cols.
    return out_padded[:, :n_out]


# ---------------------------------------------------------------------------
# Self-test.
# ---------------------------------------------------------------------------
if __name__ == "__main__":
    root = jax.random.PRNGKey(0)

    def run_case(case_id, n, d_model, n_feats, n_out, check_pallas=True, **tiles):
        kx, kf, kw = jax.random.split(jax.random.fold_in(root, case_id), 3)
        x = jax.random.normal(kx, (n, d_model), dtype=jnp.float32)
        feats = jax.random.normal(kf, (n, n_feats), dtype=jnp.float32)
        # nn.Linear default init: U(-1/sqrt(fan_in), 1/sqrt(fan_in)), no bias.
        fan_in = d_model + n_feats
        bound = 1.0 / (fan_in ** 0.5)
        weight = jax.random.uniform(kw, (n_out, fan_in), minval=-bound,
                                    maxval=bound, dtype=jnp.float32)

        # One-time bf16 weight prep (hoisted out of the per-call path).
        w_x, w_f = prepare_linfeat_weights(weight, d_model)
        w_x, w_f = jax.block_until_ready((w_x, w_f))

        out = linfeat_concat(x, feats, w_x, w_f, n_out,
                             force_pallas=check_pallas, **tiles)
        out = jax.block_until_ready(out)
        assert out.shape == (n, n_out), (case_id, out.shape)

        # Tight check vs. the same bf16-weight / f32-accumulation math in XLA.
        ref_bf16 = _linfeat_dense(x, feats, w_x, w_f, n_out, out.dtype, False)
        assert jnp.allclose(out, ref_bf16, atol=1e-3, rtol=1e-3), case_id
        # Module-semantics (f32 concat @ W.T) reference; tolerance covers bf16.
        ref_f32 = jnp.concatenate([x, feats], axis=1) @ weight.T
        assert jnp.allclose(out, ref_f32, atol=5e-2, rtol=5e-2), case_id

    # Case 0: toy shapes matching the PyTorch module (single tile everywhere).
    run_case(0, n=8, d_model=32, n_feats=8, n_out=16)
    # Case 1: exercises row / output-column / K tiling (grid (2,2,2)), a
    # partial row tile, and the f32 VMEM accumulator path.
    run_case(1, n=200, d_model=256, n_feats=8, n_out=200,
             tm_max=128, tn_max=128, tk_max=128)
    # Case 2: the small-batch plain-jnp fallback path.
    run_case(2, n=8, d_model=32, n_feats=8, n_out=16, check_pallas=False)

    print("KERNEL_OK")
</pallas_src>

<mosaic_0001>
module attributes {stable_mosaic.version = 11 : i64} {
  func.func @_linfeat_kernel(%arg0: i32, %arg1: i32, %arg2: i32, %arg3: memref<8x32xf32, #tpu.memory_space<vmem>>, %arg4: memref<8x8xf32, #tpu.memory_space<vmem>>, %arg5: memref<32x128xbf16, #tpu.memory_space<vmem>>, %arg6: memref<8x128xbf16, #tpu.memory_space<vmem>>, %arg7: memref<8x128xf32, #tpu.memory_space<vmem>>) attributes {dimension_semantics = [#tpu.dimension_semantics<parallel>, #tpu.dimension_semantics<parallel>, #tpu.dimension_semantics<arbitrary>], iteration_bounds = array<i64: 1, 1, 1>, scalar_prefetch = 0 : i64, scratch_operands = 0 : i64, tpu.core_type = #tpu.core_type<tc>, window_params = [{transform_indices = @transform_0, window_bounds = array<i64: 8, 32>}, {transform_indices = @transform_1, window_bounds = array<i64: 8, 8>}, {pipeline_mode = #tpu.pipeline_mode<synchronous>, transform_indices = @transform_2, window_bounds = array<i64: 32, 128>}, {pipeline_mode = #tpu.pipeline_mode<synchronous>, transform_indices = @transform_3, window_bounds = array<i64: 8, 128>}, {transform_indices = @transform_4, window_bounds = array<i64: 8, 128>}]} {
    %c0 = arith.constant 0 : index
    %c0_0 = arith.constant 0 : index
    %0 = vector.load %arg3[%c0, %c0_0] : memref<8x32xf32, #tpu.memory_space<vmem>>, vector<8x32xf32>
    %1 = arith.truncf %0 : vector<8x32xf32> to vector<8x32xbf16>
    %c0_1 = arith.constant 0 : index
    %c0_2 = arith.constant 0 : index
    %2 = vector.load %arg5[%c0_1, %c0_2] : memref<32x128xbf16, #tpu.memory_space<vmem>>, vector<32x128xbf16>
    %cst = arith.constant dense<0.000000e+00> : vector<8x128xf32>
    %3 = tpu.matmul %1, %2, %cst {dimension_numbers = #tpu.dot_dimension_numbers<[1], [0], [0], [1], [0, 0, 1, 1], [], []>} : vector<8x32xbf16>, vector<32x128xbf16>, vector<8x128xf32> -> vector<8x128xf32>
    %c0_3 = arith.constant 0 : index
    %c0_4 = arith.constant 0 : index
    %4 = vector.load %arg4[%c0_3, %c0_4] : memref<8x8xf32, #tpu.memory_space<vmem>>, vector<8x8xf32>
    %5 = arith.truncf %4 : vector<8x8xf32> to vector<8x8xbf16>
    %c0_5 = arith.constant 0 : index
    %c0_6 = arith.constant 0 : index
    %6 = vector.load %arg6[%c0_5, %c0_6] : memref<8x128xbf16, #tpu.memory_space<vmem>>, vector<8x128xbf16>
    %cst_7 = arith.constant dense<0.000000e+00> : vector<8x128xf32>
    %7 = tpu.matmul %5, %6, %cst_7 {dimension_numbers = #tpu.dot_dimension_numbers<[1], [0], [0], [1], [0, 0, 1, 1], [], []>} : vector<8x8xbf16>, vector<8x128xbf16>, vector<8x128xf32> -> vector<8x128xf32>
    %8 = arith.addf %3, %7 : vector<8x128xf32>
    %c0_8 = arith.constant 0 : index
    %c0_9 = arith.constant 0 : index
    %9 = vector.load %arg7[%c0_8, %c0_9] : memref<8x128xf32, #tpu.memory_space<vmem>>, vector<8x128xf32>
    tpu.vector_store %arg7[%c0_8, %c0_9], %8 {strides = array<i32>} : memref<8x128xf32, #tpu.memory_space<vmem>>, vector<8x128xf32>,
    return
  }
  func.func @transform_0(%arg0: i32, %arg1: i32, %arg2: i32) -> (i32, i32) {
    %c0_i32 = arith.constant 0 : i32
    return %arg0, %arg2 : i32, i32
  }
  func.func @transform_1(%arg0: i32, %arg1: i32, %arg2: i32) -> (i32, i32) {
    %c0_i32 = arith.constant 0 : i32
    %c0_i32_0 = arith.constant 0 : i32
    return %arg0, %c0_i32 : i32, i32
  }
  func.func @transform_2(%arg0: i32, %arg1: i32, %arg2: i32) -> (i32, i32) {
    %c0_i32 = arith.constant 0 : i32
    return %arg2, %arg1 : i32, i32
  }
  func.func @transform_3(%arg0: i32, %arg1: i32, %arg2: i32) -> (i32, i32) {
    %c0_i32 = arith.constant 0 : i32
    %c0_i32_0 = arith.constant 0 : i32
    return %c0_i32, %arg1 : i32, i32
  }
  func.func @transform_4(%arg0: i32, %arg1: i32, %arg2: i32) -> (i32, i32) {
    %c0_i32 = arith.constant 0 : i32
    return %arg0, %arg1 : i32, i32
  }
}

module attributes {stable_mosaic.version = 11 : i64} {
  func.func @_linfeat_kernel(%arg0: i32, %arg1: i32, %arg2: i32, %arg3: memref<8x32xf32, #tpu.memory_space<vmem>>, %arg4: memref<8x8xf32, #tpu.memory_space<vmem>>, %arg5: memref<32x128xbf16, #tpu.memory_space<vmem>>, %arg6: memref<8x128xbf16, #tpu.memory_space<vmem>>, %arg7: memref<8x128xf32, #tpu.memory_space<vmem>>) attributes {dimension_semantics = [#tpu.dimension_semantics<parallel>, #tpu.dimension_semantics<parallel>, #tpu.dimension_semantics<arbitrary>], iteration_bounds = array<i64: 1, 1, 1>, scalar_prefetch = 0 : i64, scratch_operands = 0 : i64, tpu.core_type = #tpu.core_type<tc>, window_params = [{transform_indices = @transform_0, window_bounds = array<i64: 8, 32>}, {transform_indices = @transform_1, window_bounds = array<i64: 8, 8>}, {transform_indices = @transform_2, window_bounds = array<i64: 32, 128>}, {transform_indices = @transform_3, window_bounds = array<i64: 8, 128>}, {transform_indices = @transform_4, window_bounds = array<i64: 8, 128>}]} {
    %c0 = arith.constant 0 : index
    %c0_0 = arith.constant 0 : index
    %0 = vector.load %arg3[%c0, %c0_0] : memref<8x32xf32, #tpu.memory_space<vmem>>, vector<8x32xf32>
    %1 = arith.truncf %0 : vector<8x32xf32> to vector<8x32xbf16>
    %c0_1 = arith.constant 0 : index
    %c0_2 = arith.constant 0 : index
    %2 = vector.load %arg5[%c0_1, %c0_2] : memref<32x128xbf16, #tpu.memory_space<vmem>>, vector<32x128xbf16>
    %cst = arith.constant dense<0.000000e+00> : vector<8x128xf32>
    %3 = tpu.matmul %1, %2, %cst {dimension_numbers = #tpu.dot_dimension_numbers<[1], [0], [0], [1], [0, 0, 1, 1], [], []>} : vector<8x32xbf16>, vector<32x128xbf16>, vector<8x128xf32> -> vector<8x128xf32>
    %c0_3 = arith.constant 0 : index
    %c0_4 = arith.constant 0 : index
    %4 = vector.load %arg4[%c0_3, %c0_4] : memref<8x8xf32, #tpu.memory_space<vmem>>, vector<8x8xf32>
    %5 = arith.truncf %4 : vector<8x8xf32> to vector<8x8xbf16>
    %c0_5 = arith.constant 0 : index
    %c0_6 = arith.constant 0 : index
    %6 = vector.load %arg6[%c0_5, %c0_6] : memref<8x128xbf16, #tpu.memory_space<vmem>>, vector<8x128xbf16>
    %cst_7 = arith.constant dense<0.000000e+00> : vector<8x128xf32>
    %7 = tpu.matmul %5, %6, %cst_7 {dimension_numbers = #tpu.dot_dimension_numbers<[1], [0], [0], [1], [0, 0, 1, 1], [], []>} : vector<8x8xbf16>, vector<8x128xbf16>, vector<8x128xf32> -> vector<8x128xf32>
    %8 = arith.addf %3, %7 : vector<8x128xf32>
    %c0_8 = arith.constant 0 : index
    %c0_9 = arith.constant 0 : index
    %9 = vector.load %arg7[%c0_8, %c0_9] : memref<8x128xf32, #tpu.memory_space<vmem>>, vector<8x128xf32>
    tpu.vector_store %arg7[%c0_8, %c0_9], %8 {strides = array<i32>} : memref<8x128xf32, #tpu.memory_space<vmem>>, vector<8x128xf32>,
    return
  }
  func.func @transform_0(%arg0: i32, %arg1: i32, %arg2: i32) -> (i32, i32) {
    %c0_i32 = arith.constant 0 : i32
    return %arg0, %arg2 : i32, i32
  }
  func.func @transform_1(%arg0: i32, %arg1: i32, %arg2: i32) -> (i32, i32) {
    %c0_i32 = arith.constant 0 : i32
    %c0_i32_0 = arith.constant 0 : i32
    return %arg0, %c0_i32 : i32, i32
  }
  func.func @transform_2(%arg0: i32, %arg1: i32, %arg2: i32) -> (i32, i32) {
    %c0_i32 = arith.constant 0 : i32
    return %arg2, %arg1 : i32, i32
  }
  func.func @transform_3(%arg0: i32, %arg1: i32, %arg2: i32) -> (i32, i32) {
    %c0_i32 = arith.constant 0 : i32
    %c0_i32_0 = arith.constant 0 : i32
    return %c0_i32, %arg1 : i32, i32
  }
  func.func @transform_4(%arg0: i32, %arg1: i32, %arg2: i32) -> (i32, i32) {
    %c0_i32 = arith.constant 0 : i32
    return %arg0, %arg1 : i32, i32
  }
}

</mosaic_0001>

<bundles_post_ra>
// kernel: tpu_custom_call.1
= control target key start
LH: loop header
LB: loop body
LE: loop exit
PB: predicated region body
PF: predicated region fallthrough
CT: control target
= control target key end

     0   :  { %9 = vsyncpa [#allocation3], 0  ;;  %s353_s0 = inlined_call_operand.hbm [shape: f32[8,32], index: 0, kind: input, shape index: {}]   ;;  %s354_s1 = inlined_call_operand.hbm [shape: f32[8,8], index: 1, kind: input, shape index: {}]   ;;  %s355_s2 = inlined_call_operand.hbm [shape: bf16[32,128], index: 2, kind: input, shape index: {}]   ;;  %s356_s3 = inlined_call_operand.vmem [shape: bf16[8,128], index: 3, kind: input, shape index: {}]   ;;  %s357_s4 = inlined_call_operand.hbm [shape: f32[8,128], index: 4, kind: output, shape index: {}]  }
   0x1   :  { %10 = vsyncpa [#allocation6], 0 }
   0x2   :  { %11 = vsyncpa [#allocation4], 0  ;;  %s305_s15 = smov [#allocation5]   ;;  %s306_s17 = smov [#allocation2]  }
   0x3   :  { %s28_s16 = sshll.u32 %s305_s15, 4  ;;  %s18_s18 = sshll.u32 %s306_s17, 4  ;;  %s29_s16 = int_to_ptr.vmem [resolvable:$true] %s28_s16  ;;  %s19_s18 = int_to_ptr.vmem [resolvable:$true] %s18_s18 }
   0x4   :  { %s227_s19 = scalar_lea.vmem %s29_s16, 128  ;;  %p232_p1 = scmp.lt.s32.totalorder %s29_s16, %s29_s16 }
   0x5   :  { %p228_p0 = scmp.ne.s32.totalorder %s29_s16, %s227_s19  ;;  %p233_p2 = scmp.lt.s32.totalorder %s227_s19, %s227_s19 }
   0x7   :  { %p234_p3 = por %p233_p2, %p232_p1 }
   0x9   :  { %p235_p4 = pnand %p234_p3, %p228_p0 }
   0xb   :  { %238 = shalt.err (!%p235_p4)
}
   0xc   :  { %31 = dma.hbm_to_vmem [thread:$0]  %s354_s1, 128, %s29_s16, [#allocation6]  }
   0xd   :  { %s247_s22 = scalar_lea.vmem %s19_s18, 128  ;;  %p252_p6 = scmp.lt.s32.totalorder %s19_s18, %s19_s18 }
   0xe   :  { %p248_p5 = scmp.ne.s32.totalorder %s19_s18, %s247_s22  ;;  %p253_p7 = scmp.lt.s32.totalorder %s247_s22, %s247_s22 }
  0x10   :  { %p254_p8 = por %p253_p7, %p252_p6 }
  0x12   :  { %p255_p9 = pnand %p254_p8, %p248_p5 }
  0x14   :  { %258 = shalt.err (!%p255_p9)
}
  0x15   :  { %21 = dma.hbm_to_vmem [thread:$0]  %s353_s0, 128, %s19_s18, [#allocation3]  }
  0x16   :  { %s307_s25 = smov [#allocation7]  }
  0x17   :  { %s37_s26 = sshll.u32 %s307_s25, 4  ;;  %s38_s26 = int_to_ptr.vmem [resolvable:$true] %s37_s26 }
  0x18   :  { %s267_s27 = scalar_lea.vmem %s38_s26, 256  ;;  %p272_p11 = scmp.lt.s32.totalorder %s38_s26, %s38_s26 }
  0x19   :  { %p268_p10 = scmp.ne.s32.totalorder %s38_s26, %s267_s27  ;;  %p273_p12 = scmp.lt.s32.totalorder %s267_s27, %s267_s27 }
  0x1b   :  { %p274_p13 = por %p273_p12, %p272_p11 }
  0x1d   :  { %p275_p0 = pnand %p274_p13, %p268_p10 }
  0x1f   :  { %278 = shalt.err (!%p275_p0)
}
  0x20   :  { %s308_s1 = smov 64   ;;  %s309_s28 = smov 4  }
  0x21   :  { %43 = dma.hbm_to_vmem [thread:$0]  %s355_s2, 256, %s38_s26, [#allocation6], %s308_s1, %s308_s1, %s309_s28  }
  0x22   :  { %299 = dma.done.wait [#allocation3], 128  }
  0x23   :  { %300 = vsyncadd [#allocation3], 4294967168 }
  0x24   :  { %301 = dma.done.wait [#allocation6], 384  }
  0x25   :  { %302 = vsyncadd [#allocation6], 4294966912  ;;  %v310_v0 = vmov 0.0   ;;  %vm311_vm0 = vmmov 0   ;;  %vm69_vm1 = vcmask 1043456   ;;  %v217_v3 = vld [vmem:[#allocation7 + $0x8] sm:$0xff]  }
  0x26   :  { %195 = vmatprep.subr.bf16.mxu0 %v310_v0  ;;  %201 = vmatprep.subr.bf16.mxu1 %v310_v0  ;;  %v64_v1 = vld [vmem:[%s356_s3] sm:$0xf]  ;;  %v62_v4 = vld [vmem:[#allocation5] sm:$0xff]  ;;  %vm65_vm2 = vcmask 64512   ;;  %v218_v6 = vld [vmem:[#allocation7] sm:$0xff]   ;;  %vm125_vm3 = vcmask 261120  }
  0x27   :  { %197 = vmatprep.mubr.msk.bf16.mxu0 %vm311_vm0, %v310_v0  ;;  %205 = vmatprep.mubr.msk.bf16.mxu1 %vm311_vm0, %v310_v0  ;;  %v71_v2 = vsel %vm69_vm1, %v64_v1, 0  ;;  %v63_v5 = vpack.c.bf16 %v62_v4, %v62_v4  ;;  %v56_v7 = vld [vmem:[#allocation2] sm:$0xff]  ;;  %s312_s2 = smov [#allocation8]  }
  0x28   :  { %196 = vmatpush3.bf16.msra.mxu0 %v71_v2  ;;  %202 = vmatpush3.bf16.msra.mxu1 %v217_v3  ;;  %v57_v8 = vpack.c.bf16 %v56_v7, %v56_v7  ;;  %s176_s6 = sshll.u32 %s312_s2, 4  ;;  %s177_s6 = int_to_ptr.vmem [resolvable:$true] %s176_s6 }
  0x29   :  { %203 = vmatprep.subr.bf16.mxu1 %v310_v0  ;;  %s279_s3 = scalar_lea.vmem %s177_s6, 128  ;;  %p284_p2 = scmp.lt.s32.totalorder %s177_s6, %s177_s6 }
  0x2a   :  { %p280_p1 = scmp.ne.s32.totalorder %s177_s6, %s279_s3  ;;  %p285_p3 = scmp.lt.s32.totalorder %s279_s3, %s279_s3 }
  0x2b   :  { %198 = vmatmul.mubr.msk.bf16.vlgmr.msra.gmra.mxu0 %vm65_vm2, %v63_v5 }
  0x2c   :  { %204 = vmatpush3.bf16.msra.mxu1 %v218_v6  ;;  %p286_p4 = por %p285_p3, %p284_p2 }
  0x2e   :  { %p287_p5 = pnand %p286_p4, %p280_p1 }
  0x2f   :  { %206 = vmatmul.mubr.msk.bf16.vlgmr.msra.gmra.mxu1 %vm125_vm3, %v57_v8 }
  0xeb   :  { %v107_v9 = vpop.f32.mrf.mxu0 }
  0xed   :  { %v199_v10 = vpop.f32.mrf.mxu0 }
  0xef   :  { %v110_v11 = vpop.f32.mrf.mxu0  ;;  %v163_v12 = vpop.f32.mrf.mxu1 }
  0xf0   :  { %v164_v13 = vadd.f32 %v163_v12, %v107_v9 }
  0xf1   :  { %v200_v14 = vpop.f32.mrf.mxu0  ;;  %v207_v15 = vpop.f32.mrf.mxu1 }
  0xf2   :  { %169 = vst [vmem:[#allocation8] sm:$0xff] %v164_v13 }
  0xf3   :  { %v166_v16 = vpop.f32.mrf.mxu1 }
  0xf4   :  { %290 = shalt.err (!%p287_p5)
}
  0xf5   :  { %179 = dma.vmem_to_hbm [thread:$0]  %s177_s6, 128, %s357_s4, [#allocation4]   ;;  %v208_v17 = vpop.f32.mrf.mxu1 }
  0xf6   :  { %303 = dma.done.wait [#allocation4], 128  }
  0xf7   :  { %304 = vsyncadd [#allocation4], 4294967168 }
  0xf8   :  { %183 = vsyncpa [#allocation3], 1 }
  0xf9   :  { %184 = vsyncpa [#allocation6], 1 }
  0xfa   :  { %185 = vsyncpa [#allocation4], 1 }

// kernel: tpu_custom_call.1
= control target key start
LH: loop header
LB: loop body
LE: loop exit
PB: predicated region body
PF: predicated region fallthrough
CT: control target
= control target key end

     0   :  { %9 = vsyncpa [#allocation3], 0  ;;  %s353_s0 = inlined_call_operand.hbm [shape: f32[8,32], index: 0, kind: input, shape index: {}]   ;;  %s354_s1 = inlined_call_operand.hbm [shape: f32[8,8], index: 1, kind: input, shape index: {}]   ;;  %s355_s2 = inlined_call_operand.hbm [shape: bf16[32,128], index: 2, kind: input, shape index: {}]   ;;  %s356_s3 = inlined_call_operand.vmem [shape: bf16[8,128], index: 3, kind: input, shape index: {}]   ;;  %s357_s4 = inlined_call_operand.hbm [shape: f32[8,128], index: 4, kind: output, shape index: {}]  }
   0x1   :  { %10 = vsyncpa [#allocation6], 0 }
   0x2   :  { %11 = vsyncpa [#allocation4], 0  ;;  %s305_s15 = smov [#allocation5]   ;;  %s306_s17 = smov [#allocation2]  }
   0x3   :  { %s28_s16 = sshll.u32 %s305_s15, 4  ;;  %s18_s18 = sshll.u32 %s306_s17, 4  ;;  %s29_s16 = int_to_ptr.vmem [resolvable:$true] %s28_s16  ;;  %s19_s18 = int_to_ptr.vmem [resolvable:$true] %s18_s18 }
   0x4   :  { %s227_s19 = scalar_lea.vmem %s29_s16, 128  ;;  %p232_p1 = scmp.lt.s32.totalorder %s29_s16, %s29_s16 }
   0x5   :  { %p228_p0 = scmp.ne.s32.totalorder %s29_s16, %s227_s19  ;;  %p233_p2 = scmp.lt.s32.totalorder %s227_s19, %s227_s19 }
   0x7   :  { %p234_p3 = por %p233_p2, %p232_p1 }
   0x9   :  { %p235_p4 = pnand %p234_p3, %p228_p0 }
   0xb   :  { %238 = shalt.err (!%p235_p4)
}
   0xc   :  { %31 = dma.hbm_to_vmem [thread:$0]  %s354_s1, 128, %s29_s16, [#allocation6]  }
   0xd   :  { %s247_s22 = scalar_lea.vmem %s19_s18, 128  ;;  %p252_p6 = scmp.lt.s32.totalorder %s19_s18, %s19_s18 }
   0xe   :  { %p248_p5 = scmp.ne.s32.totalorder %s19_s18, %s247_s22  ;;  %p253_p7 = scmp.lt.s32.totalorder %s247_s22, %s247_s22 }
  0x10   :  { %p254_p8 = por %p253_p7, %p252_p6 }
  0x12   :  { %p255_p9 = pnand %p254_p8, %p248_p5 }
  0x14   :  { %258 = shalt.err (!%p255_p9)
}
  0x15   :  { %21 = dma.hbm_to_vmem [thread:$0]  %s353_s0, 128, %s19_s18, [#allocation3]  }
  0x16   :  { %s307_s25 = smov [#allocation7]  }
  0x17   :  { %s37_s26 = sshll.u32 %s307_s25, 4  ;;  %s38_s26 = int_to_ptr.vmem [resolvable:$true] %s37_s26 }
  0x18   :  { %s267_s27 = scalar_lea.vmem %s38_s26, 256  ;;  %p272_p11 = scmp.lt.s32.totalorder %s38_s26, %s38_s26 }
  0x19   :  { %p268_p10 = scmp.ne.s32.totalorder %s38_s26, %s267_s27  ;;  %p273_p12 = scmp.lt.s32.totalorder %s267_s27, %s267_s27 }
  0x1b   :  { %p274_p13 = por %p273_p12, %p272_p11 }
  0x1d   :  { %p275_p0 = pnand %p274_p13, %p268_p10 }
  0x1f   :  { %278 = shalt.err (!%p275_p0)
}
  0x20   :  { %s308_s1 = smov 64   ;;  %s309_s28 = smov 4  }
  0x21   :  { %43 = dma.hbm_to_vmem [thread:$0]  %s355_s2, 256, %s38_s26, [#allocation6], %s308_s1, %s308_s1, %s309_s28  }
  0x22   :  { %299 = dma.done.wait [#allocation3], 128  }
  0x23   :  { %300 = vsyncadd [#allocation3], 4294967168 }
  0x24   :  { %301 = dma.done.wait [#allocation6], 384  }
  0x25   :  { %302 = vsyncadd [#allocation6], 4294966912  ;;  %v310_v0 = vmov 0.0   ;;  %vm311_vm0 = vmmov 0   ;;  %vm69_vm1 = vcmask 1043456   ;;  %v217_v3 = vld [vmem:[#allocation7 + $0x8] sm:$0xff]  }
  0x26   :  { %195 = vmatprep.subr.bf16.mxu0 %v310_v0  ;;  %201 = vmatprep.subr.bf16.mxu1 %v310_v0  ;;  %v64_v1 = vld [vmem:[%s356_s3] sm:$0xf]  ;;  %v62_v4 = vld [vmem:[#allocation5] sm:$0xff]  ;;  %vm65_vm2 = vcmask 64512   ;;  %v218_v6 = vld [vmem:[#allocation7] sm:$0xff]   ;;  %vm125_vm3 = vcmask 261120  }
  0x27   :  { %197 = vmatprep.mubr.msk.bf16.mxu0 %vm311_vm0, %v310_v0  ;;  %205 = vmatprep.mubr.msk.bf16.mxu1 %vm311_vm0, %v310_v0  ;;  %v71_v2 = vsel %vm69_vm1, %v64_v1, 0  ;;  %v63_v5 = vpack.c.bf16 %v62_v4, %v62_v4  ;;  %v56_v7 = vld [vmem:[#allocation2] sm:$0xff]  ;;  %s312_s2 = smov [#allocation8]  }
  0x28   :  { %196 = vmatpush3.bf16.msra.mxu0 %v71_v2  ;;  %202 = vmatpush3.bf16.msra.mxu1 %v217_v3  ;;  %v57_v8 = vpack.c.bf16 %v56_v7, %v56_v7  ;;  %s176_s6 = sshll.u32 %s312_s2, 4  ;;  %s177_s6 = int_to_ptr.vmem [resolvable:$true] %s176_s6 }
  0x29   :  { %203 = vmatprep.subr.bf16.mxu1 %v310_v0  ;;  %s279_s3 = scalar_lea.vmem %s177_s6, 128  ;;  %p284_p2 = scmp.lt.s32.totalorder %s177_s6, %s177_s6 }
  0x2a   :  { %p280_p1 = scmp.ne.s32.totalorder %s177_s6, %s279_s3  ;;  %p285_p3 = scmp.lt.s32.totalorder %s279_s3, %s279_s3 }
  0x2b   :  { %198 = vmatmul.mubr.msk.bf16.vlgmr.msra.gmra.mxu0 %vm65_vm2, %v63_v5 }
  0x2c   :  { %204 = vmatpush3.bf16.msra.mxu1 %v218_v6  ;;  %p286_p4 = por %p285_p3, %p284_p2 }
  0x2e   :  { %p287_p5 = pnand %p286_p4, %p280_p1 }
  0x2f   :  { %206 = vmatmul.mubr.msk.bf16.vlgmr.msra.gmra.mxu1 %vm125_vm3, %v57_v8 }
  0xeb   :  { %v107_v9 = vpop.f32.mrf.mxu0 }
  0xed   :  { %v199_v10 = vpop.f32.mrf.mxu0 }
  0xef   :  { %v110_v11 = vpop.f32.mrf.mxu0  ;;  %v163_v12 = vpop.f32.mrf.mxu1 }
  0xf0   :  { %v164_v13 = vadd.f32 %v163_v12, %v107_v9 }
  0xf1   :  { %v200_v14 = vpop.f32.mrf.mxu0  ;;  %v207_v15 = vpop.f32.mrf.mxu1 }
  0xf2   :  { %169 = vst [vmem:[#allocation8] sm:$0xff] %v164_v13 }
  0xf3   :  { %v166_v16 = vpop.f32.mrf.mxu1 }
  0xf4   :  { %290 = shalt.err (!%p287_p5)
}
  0xf5   :  { %179 = dma.vmem_to_hbm [thread:$0]  %s177_s6, 128, %s357_s4, [#allocation4]   ;;  %v208_v17 = vpop.f32.mrf.mxu1 }
  0xf6   :  { %303 = dma.done.wait [#allocation4], 128  }
  0xf7   :  { %304 = vsyncadd [#allocation4], 4294967168 }
  0xf8   :  { %183 = vsyncpa [#allocation3], 1 }
  0xf9   :  { %184 = vsyncpa [#allocation6], 1 }
  0xfa   :  { %185 = vsyncpa [#allocation4], 1 }

</bundles_post_ra>
